<compile_context>
chip_gen: v5e
topology: v5e:2x2
jax: 0.10.0
libtpu: 0.0.40
codegen_flags: <defaults>
</compile_context>

<pallas_src>
import functools
import math

import jax
import jax.numpy as jnp
from jax import lax
from jax.experimental import pallas as pl
from jax.experimental.pallas import tpu as pltpu

EPS = 1e-12
_VMEM_LIMIT = 32 * 1024 * 1024          # safe scoped limit on v5e / v6e / v7x
_TARGET_TILE_BYTES = 4 * 1024 * 1024    # ~4 MiB per input tile (mem-bound sweet spot)
_MAX_TB = 8192                          # rows per tile cap


# ---------------------------------------------------------------------------
# Kernels
# ---------------------------------------------------------------------------
def _actnorm_init_kernel(x_ref, sum_ref, sumsq_ref, acc_s, acc_sq, *, n_rows):
    """Streaming sum / sum-of-squares over batch tiles.

    Ragged boundary tiles are handled in-kernel: rows >= n_rows (garbage from the
    partially-OOB boundary block) are masked to zero before accumulation, so no
    wrapper-side padding copy is needed.  Accumulation is into an (8, Df) scratch
    with plain vector adds; the cross-sublane reduce happens only on the last step.
    """
    step = pl.program_id(0)
    tb = x_ref.shape[0]

    @pl.when(step == 0)
    def _():
        acc_s[...] = jnp.zeros_like(acc_s)
        acc_sq[...] = jnp.zeros_like(acc_sq)

    x = x_ref[...].astype(jnp.float32)                                # (TB, Df)
    row = step * tb + lax.broadcasted_iota(jnp.int32, (tb, 1), 0)     # (TB, 1)
    xm = jnp.where(row < n_rows, x, 0.0)
    xr = xm.reshape(tb // 8, 8, xm.shape[-1])                         # sublane groups
    acc_s[...] += jnp.sum(xr, axis=0)                                 # (8, Df) VPU adds
    acc_sq[...] += jnp.sum(xr * xr, axis=0)

    @pl.when(step == pl.num_programs(0) - 1)
    def _():
        sum_ref[...] = jnp.sum(acc_s[...], axis=0, keepdims=True)     # (1, Df)
        sumsq_ref[...] = jnp.sum(acc_sq[...], axis=0, keepdims=True)  # (1, Df)


def _actnorm_fwd_kernel(x_ref, s_ref, b_ref, out_ref, *, direct):
    """Batch-tiled affine transform: scale/bias stay resident (1, Df) blocks, the
    (1,Df)x(TB,Df) broadcast happens implicitly on the VPU.  exp() is pre-computed
    in the wrapper, so the steady state is vld + vfma + vst only."""
    x = x_ref[...]                                                    # (TB, Df)
    s = s_ref[...]                                                    # (1, Df)
    b = b_ref[...]                                                    # (1, Df)
    if direct:
        out_ref[...] = ((x - b) * s).astype(out_ref.dtype)
    else:
        out_ref[...] = (x * s + b).astype(out_ref.dtype)


# ---------------------------------------------------------------------------
# Tiling helpers
# ---------------------------------------------------------------------------
def _round_up(a, b):
    return ((a + b - 1) // b) * b


def _pick_tb(n_rows, n_cols, itemsize):
    """Rows per tile: ~4 MiB per input tile, rounded to the dtype's sublane packing,
    and shrunk if needed so the batch grid keeps >= 2 steps (v7x megacore)."""
    sub = max(8, 32 // max(1, itemsize))                  # 8 f32 / 16 bf16 / 32 int8
    tb = max(sub, _TARGET_TILE_BYTES // max(1, n_cols * itemsize))
    tb = min(tb, _MAX_TB, _round_up(n_rows, sub))
    if n_rows >= 2 * sub:                                 # keep >= 2 grid steps
        tb = min(tb, _round_up((n_rows + 1) // 2, sub))
    tb = max(sub, (tb // sub) * sub)
    return int(tb)


def _fold_factor(dim):
    """Fold k batch rows into the lane axis so k*dim is a multiple of 128 (lane-dense
    loads / unmasked full-width stores).  Returns 1 when dim already lane-aligned."""
    if dim % 128 == 0:
        return 1
    return 128 // math.gcd(dim, 128)


# ---------------------------------------------------------------------------
# Wrappers
# ---------------------------------------------------------------------------
def actnorm_data_init(x):
    """Returns (weight, bias), each (num_inputs,), from the first batch (ddof=1 std)."""
    B, D = x.shape

    # Lane-dense fold for small D (only when no pad rows would be needed; init is
    # one-time, so the fall-back lane-sparse path is acceptable otherwise).
    k = _fold_factor(D)
    if k > 1 and B % k == 0:
        xf = x.reshape(B // k, k * D)
    else:
        k = 1
        xf = x
    Bf, Df = xf.shape

    TB = _pick_tb(Bf, Df, jnp.dtype(x.dtype).itemsize)
    grid = pl.cdiv(Bf, TB)

    s, sq = pl.pallas_call(
        functools.partial(_actnorm_init_kernel, n_rows=Bf),
        grid=(grid,),
        out_shape=(
            jax.ShapeDtypeStruct((1, Df), jnp.float32),
            jax.ShapeDtypeStruct((1, Df), jnp.float32),
        ),
        in_specs=[pl.BlockSpec((TB, Df), lambda i: (i, 0))],
        out_specs=(
            pl.BlockSpec((1, Df), lambda i: (0, 0)),
            pl.BlockSpec((1, Df), lambda i: (0, 0)),
        ),
        scratch_shapes=[
            pltpu.VMEM((8, Df), jnp.float32),
            pltpu.VMEM((8, Df), jnp.float32),
        ],
        compiler_params=pltpu.CompilerParams(
            dimension_semantics=("arbitrary",),           # reduction over batch
            vmem_limit_bytes=_VMEM_LIMIT,
        ),
    )(xf)

    if k > 1:
        s = s.reshape(k, D).sum(axis=0)
        sq = sq.reshape(k, D).sum(axis=0)
    else:
        s = s[0]
        sq = sq[0]

    # Finalize in the wrapper: O(D) scalar work.
    n = jnp.float32(B)
    mean = s / n
    # Single-pass variance (f32 accumulators); see numerics note at top.
    var = (sq - n * mean * mean) / (n - 1.0)
    std = jnp.sqrt(jnp.maximum(var, 0.0))
    weight = jnp.log(1.0 / (std + EPS))
    bias = mean
    return weight, bias


def actnorm_forward(x, weight, bias, mode="direct"):
    """ActNorm forward (already-initialized path). Returns (out (B,D), logdet (B,1))."""
    B, D = x.shape
    direct = mode == "direct"

    # Hoist the transcendental out of the kernel.
    scale = (jnp.exp(weight) if direct else jnp.exp(-weight)).astype(jnp.float32)
    bias_f = bias.astype(jnp.float32)

    # Lane-dense fold for small D; pad < k rows if the batch doesn't divide k so the
    # output lane width is always a multiple of 128 (unmasked full-width stores).
    k = _fold_factor(D)
    if k > 1:
        Bp = _round_up(B, k)
        xf = jnp.pad(x, ((0, Bp - B), (0, 0))) if Bp != B else x
        xf = xf.reshape(Bp // k, k * D)
        sf = jnp.tile(scale, k)
        bf = jnp.tile(bias_f, k)
    else:
        Bp = B
        xf, sf, bf = x, scale, bias_f
    Bf, Df = xf.shape

    TB = _pick_tb(Bf, Df, jnp.dtype(x.dtype).itemsize)
    grid = pl.cdiv(Bf, TB)   # no wrapper pad: boundary blocks handle the ragged tail

    out = pl.pallas_call(
        functools.partial(_actnorm_fwd_kernel, direct=direct),
        grid=(grid,),
        out_shape=jax.ShapeDtypeStruct((Bf, Df), x.dtype),
        in_specs=[
            pl.BlockSpec((TB, Df), lambda i: (i, 0)),
            pl.BlockSpec((1, Df), lambda i: (0, 0)),     # scale stays resident
            pl.BlockSpec((1, Df), lambda i: (0, 0)),     # bias stays resident
        ],
        out_specs=pl.BlockSpec((TB, Df), lambda i: (i, 0)),
        compiler_params=pltpu.CompilerParams(
            dimension_semantics=("parallel",),            # megacore sharding on v7x
            vmem_limit_bytes=_VMEM_LIMIT,
        ),
    )(xf, sf.reshape(1, Df), bf.reshape(1, Df))

    if k > 1:
        out = out.reshape(Bp, D)
        if Bp != B:
            out = out[:B]

    # logdet is O(D) scalar work: compute once in the wrapper and broadcast to (B, 1).
    wsum = jnp.sum(weight.astype(jnp.float32))
    logdet = jnp.broadcast_to(wsum if direct else -wsum, (B, 1)).astype(jnp.float32)
    return out, logdet


class ActNormPallas:
    """Stateful wrapper mirroring the PyTorch module's lazy in-place init behaviour."""

    def __init__(self, num_inputs):
        # same deterministic init as nn.Parameter(torch.ones / torch.zeros)
        self.weight = jnp.ones((num_inputs,), jnp.float32)
        self.bias = jnp.zeros((num_inputs,), jnp.float32)
        self.initialized = False

    def __call__(self, inputs, mode="direct"):
        if not self.initialized:
            # TODO(synk): first call streams x from HBM twice (init + transform);
            # could be fused, but init happens once per training run.
            self.weight, self.bias = actnorm_data_init(inputs)
            self.initialized = True
        return actnorm_forward(inputs, self.weight, self.bias, mode=mode)


# ---------------------------------------------------------------------------
# Main
# ---------------------------------------------------------------------------
if __name__ == "__main__":
    key = jax.random.PRNGKey(0)
    k0, k1, k2, k3, k4 = jax.random.split(key, 5)

    # --- primary check: lazy init + direct / inverse, small fully-connected shape ---
    B, D = 8, 32
    x = jax.random.normal(k0, (B, D), dtype=jnp.float32) * 2.0 + 0.5

    layer = ActNormPallas(D)
    out, logdet = layer(x, mode="direct")
    out = jax.block_until_ready(out)
    logdet = jax.block_until_ready(logdet)

    mean_ref = jnp.mean(x, axis=0)
    std_ref = jnp.std(x, axis=0, ddof=1)
    w_ref = jnp.log(1.0 / (std_ref + EPS))
    out_ref = (x - mean_ref) * jnp.exp(w_ref)
    logdet_ref = jnp.broadcast_to(jnp.sum(w_ref), (B, 1))

    assert out.shape == (B, D) and logdet.shape == (B, 1)
    assert jnp.allclose(out, out_ref, atol=1e-5, rtol=1e-5)
    assert jnp.allclose(logdet, logdet_ref, atol=1e-5, rtol=1e-5)

    x_rec, logdet_inv = layer(out, mode="inverse")
    x_rec = jax.block_until_ready(x_rec)
    assert jnp.allclose(x_rec, x, atol=1e-4, rtol=1e-4)
    assert jnp.allclose(logdet_inv, -logdet_ref, atol=1e-5, rtol=1e-5)

    # --- ragged-batch path (no fold, boundary blocks, no wrapper pad/slice) ---
    B2, D2 = 20, 128
    x2 = jax.random.normal(k1, (B2, D2), dtype=jnp.float32)
    w2 = jax.random.normal(k2, (D2,), dtype=jnp.float32) * 0.1
    b2 = jax.random.normal(k3, (D2,), dtype=jnp.float32)
    o2, ld2 = actnorm_forward(x2, w2, b2, mode="direct")
    o2 = jax.block_until_ready(o2)
    assert jnp.allclose(o2, (x2 - b2) * jnp.exp(w2), atol=1e-5, rtol=1e-5)
    assert jnp.allclose(ld2, jnp.broadcast_to(jnp.sum(w2), (B2, 1)), atol=1e-5, rtol=1e-5)

    # --- lane-dense fold with sub-k row pad (B % k != 0, D < 128), inverse mode ---
    B3, D3 = 10, 32
    x3 = jax.random.normal(k4, (B3, D3), dtype=jnp.float32)
    w3, b3 = w2[:D3], b2[:D3]
    o3, ld3 = actnorm_forward(x3, w3, b3, mode="inverse")
    o3 = jax.block_until_ready(o3)
    assert jnp.allclose(o3, x3 * jnp.exp(-w3) + b3, atol=1e-5, rtol=1e-5)
    assert jnp.allclose(ld3, jnp.broadcast_to(-jnp.sum(w3), (B3, 1)), atol=1e-5, rtol=1e-5)

    print("KERNEL_OK")
</pallas_src>

<mosaic_0001>
module attributes {stable_mosaic.version = 11 : i64} {
  func.func @_actnorm_init_kernel(%arg0: i32, %arg1: memref<8x128xf32, #tpu.memory_space<vmem>>, %arg2: memref<1x128xf32, #tpu.memory_space<vmem>>, %arg3: memref<1x128xf32, #tpu.memory_space<vmem>>, %arg4: memref<8x128xf32, #tpu.memory_space<vmem>>, %arg5: memref<8x128xf32, #tpu.memory_space<vmem>>) attributes {dimension_semantics = [#tpu.dimension_semantics<arbitrary>], iteration_bounds = array<i64: 1>, scalar_prefetch = 0 : i64, scratch_operands = 2 : i64, tpu.core_type = #tpu.core_type<tc>, window_params = [{transform_indices = @transform_0, window_bounds = array<i64: 8, 128>}, {pipeline_mode = #tpu.pipeline_mode<synchronous>, transform_indices = @transform_1, window_bounds = array<i64: 1, 128>}, {pipeline_mode = #tpu.pipeline_mode<synchronous>, transform_indices = @transform_2, window_bounds = array<i64: 1, 128>}]} {
    %c0_i32 = arith.constant 0 : i32
    %0 = arith.cmpi eq, %arg0, %c0_i32 : i32
    %1 = arith.extui %0 : i1 to i32
    %c0_i32_0 = arith.constant 0 : i32
    %2 = arith.cmpi ne, %1, %c0_i32_0 : i32
    scf.if %2 {
      %cst_14 = arith.constant 0.000000e+00 : f32
      %27 = vector.broadcast %cst_14 : f32 to vector<8x128xf32>
      %c0_15 = arith.constant 0 : index
      %c0_16 = arith.constant 0 : index
      %28 = vector.load %arg4[%c0_15, %c0_16] : memref<8x128xf32, #tpu.memory_space<vmem>>, vector<8x128xf32>
      tpu.vector_store %arg4[%c0_15, %c0_16], %27 {strides = array<i32>} : memref<8x128xf32, #tpu.memory_space<vmem>>, vector<8x128xf32>,
      %cst_17 = arith.constant 0.000000e+00 : f32
      %29 = vector.broadcast %cst_17 : f32 to vector<8x128xf32>
      %c0_18 = arith.constant 0 : index
      %c0_19 = arith.constant 0 : index
      %30 = vector.load %arg5[%c0_18, %c0_19] : memref<8x128xf32, #tpu.memory_space<vmem>>, vector<8x128xf32>
      tpu.vector_store %arg5[%c0_18, %c0_19], %29 {strides = array<i32>} : memref<8x128xf32, #tpu.memory_space<vmem>>, vector<8x128xf32>,
    } else {
    }
    %c0 = arith.constant 0 : index
    %c0_1 = arith.constant 0 : index
    %3 = vector.load %arg1[%c0, %c0_1] : memref<8x128xf32, #tpu.memory_space<vmem>>, vector<8x128xf32>
    %c8_i32 = arith.constant 8 : i32
    %4 = arith.muli %arg0, %c8_i32 : i32
    %5 = tpu.iota {dimensions = array<i32: 0>} : vector<8x1xi32>
    %6 = vector.broadcast %4 : i32 to vector<8x1xi32>
    %7 = arith.addi %6, %5 : vector<8x1xi32>
    %c2_i32 = arith.constant 2 : i32
    %8 = vector.broadcast %c2_i32 : i32 to vector<8x1xi32>
    %9 = arith.cmpi slt, %7, %8 : vector<8x1xi32>
    %cst = arith.constant 0.000000e+00 : f32
    %10 = vector.shape_cast %9 : vector<8x1xi1> to vector<8x1xi1>
    %11 = vector.broadcast %10 : vector<8x1xi1> to vector<8x128xi1>
    %12 = vector.broadcast %cst : f32 to vector<8x128xf32>
    %13 = arith.select %11, %3, %12 : vector<8x128xi1>, vector<8x128xf32>
    %14 = vector.shape_cast %13 : vector<8x128xf32> to vector<1x8x128xf32>
    %c0_2 = arith.constant 0 : index
    %c0_3 = arith.constant 0 : index
    %15 = vector.load %arg4[%c0_2, %c0_3] : memref<8x128xf32, #tpu.memory_space<vmem>>, vector<8x128xf32>
    %cst_4 = arith.constant dense<0.000000e+00> : vector<8x128xf32>
    %16 = vector.multi_reduction <add>, %14, %cst_4 [0] : vector<1x8x128xf32> to vector<8x128xf32>
    %17 = arith.addf %15, %16 : vector<8x128xf32>
    %c0_5 = arith.constant 0 : index
    %c0_6 = arith.constant 0 : index
    %18 = vector.load %arg4[%c0_5, %c0_6] : memref<8x128xf32, #tpu.memory_space<vmem>>, vector<8x128xf32>
    tpu.vector_store %arg4[%c0_5, %c0_6], %17 {strides = array<i32>} : memref<8x128xf32, #tpu.memory_space<vmem>>, vector<8x128xf32>,
    %c0_7 = arith.constant 0 : index
    %c0_8 = arith.constant 0 : index
    %19 = vector.load %arg5[%c0_7, %c0_8] : memref<8x128xf32, #tpu.memory_space<vmem>>, vector<8x128xf32>
    %20 = arith.mulf %14, %14 : vector<1x8x128xf32>
    %cst_9 = arith.constant dense<0.000000e+00> : vector<8x128xf32>
    %21 = vector.multi_reduction <add>, %20, %cst_9 [0] : vector<1x8x128xf32> to vector<8x128xf32>
    %22 = arith.addf %19, %21 : vector<8x128xf32>
    %c0_10 = arith.constant 0 : index
    %c0_11 = arith.constant 0 : index
    %23 = vector.load %arg5[%c0_10, %c0_11] : memref<8x128xf32, #tpu.memory_space<vmem>>, vector<8x128xf32>
    tpu.vector_store %arg5[%c0_10, %c0_11], %22 {strides = array<i32>} : memref<8x128xf32, #tpu.memory_space<vmem>>, vector<8x128xf32>,
    %c0_i32_12 = arith.constant 0 : i32
    %24 = arith.cmpi eq, %arg0, %c0_i32_12 : i32
    %25 = arith.extui %24 : i1 to i32
    %c0_i32_13 = arith.constant 0 : i32
    %26 = arith.cmpi ne, %25, %c0_i32_13 : i32
    scf.if %26 {
      %c0_14 = arith.constant 0 : index
      %c0_15 = arith.constant 0 : index
      %27 = vector.load %arg4[%c0_14, %c0_15] : memref<8x128xf32, #tpu.memory_space<vmem>>, vector<8x128xf32>
      %cst_16 = arith.constant dense<0.000000e+00> : vector<128xf32>
      %28 = vector.multi_reduction <add>, %27, %cst_16 [0] : vector<8x128xf32> to vector<128xf32>
      %29 = vector.shape_cast %28 : vector<128xf32> to vector<1x128xf32>
      %c0_17 = arith.constant 0 : index
      %c0_18 = arith.constant 0 : index
      %30 = vector.load %arg2[%c0_17, %c0_18] : memref<1x128xf32, #tpu.memory_space<vmem>>, vector<1x128xf32>
      tpu.vector_store %arg2[%c0_17, %c0_18], %29 {strides = array<i32>} : memref<1x128xf32, #tpu.memory_space<vmem>>, vector<1x128xf32>,
      %c0_19 = arith.constant 0 : index
      %c0_20 = arith.constant 0 : index
      %31 = vector.load %arg5[%c0_19, %c0_20] : memref<8x128xf32, #tpu.memory_space<vmem>>, vector<8x128xf32>
      %cst_21 = arith.constant dense<0.000000e+00> : vector<128xf32>
      %32 = vector.multi_reduction <add>, %31, %cst_21 [0] : vector<8x128xf32> to vector<128xf32>
      %33 = vector.shape_cast %32 : vector<128xf32> to vector<1x128xf32>
      %c0_22 = arith.constant 0 : index
      %c0_23 = arith.constant 0 : index
      %34 = vector.load %arg3[%c0_22, %c0_23] : memref<1x128xf32, #tpu.memory_space<vmem>>, vector<1x128xf32>
      tpu.vector_store %arg3[%c0_22, %c0_23], %33 {strides = array<i32>} : memref<1x128xf32, #tpu.memory_space<vmem>>, vector<1x128xf32>,
    } else {
    }
    return
  }
  func.func @transform_0(%arg0: i32) -> (i32, i32) {
    %c0_i32 = arith.constant 0 : i32
    %c0_i32_0 = arith.constant 0 : i32
    return %arg0, %c0_i32 : i32, i32
  }
  func.func @transform_1(%arg0: i32) -> (i32, i32) {
    %c0_i32 = arith.constant 0 : i32
    %c0_i32_0 = arith.constant 0 : i32
    %c0_i32_1 = arith.constant 0 : i32
    return %c0_i32, %c0_i32_0 : i32, i32
  }
  func.func @transform_2(%arg0: i32) -> (i32, i32) {
    %c0_i32 = arith.constant 0 : i32
    %c0_i32_0 = arith.constant 0 : i32
    %c0_i32_1 = arith.constant 0 : i32
    return %c0_i32, %c0_i32_0 : i32, i32
  }
}

</mosaic_0001>

<bundles_post_ra>
// kernel: tpu_custom_call.1
= control target key start
LH: loop header
LB: loop body
LE: loop exit
PB: predicated region body
PF: predicated region fallthrough
CT: control target
= control target key end

     0   :  { %8 = vsyncpa [#allocation5], 0  ;;  %s218_s0 = inlined_call_operand.hbm [shape: f32[2,128], index: 0, kind: input, shape index: {}]   ;;  %s219_s1 = inlined_call_operand.hbm [shape: f32[1,128], index: 1, kind: output, shape index: {0}]   ;;  %s220_s2 = inlined_call_operand.hbm [shape: f32[1,128], index: 2, kind: output, shape index: {1}]  }
   0x1   :  { %9 = vsyncpa [#allocation6], 0 }
   0x2   :  { %10 = vsyncpa [#allocation9], 0 }
   0x3   :  { %14 = vsyncadd [#allocation5], 96  ;;  %s15_s11 = sshll.u32 %s218_s0, 4  ;;  %s189_s12 = smov [#allocation4]   ;;  %s16_s11 = int_to_ptr.hbm [resolvable:$true] %s15_s11 }
   0x4   :  { %s17_s13 = sshll.u32 %s189_s12, 4  ;;  %s190_s14 = smov 32   ;;  %s18_s13 = int_to_ptr.vmem [resolvable:$true] %s17_s13 }
   0x5   :  { %s191_s15 = smov 2  }
   0x6   :  { %23 = dma.hbm_to_vmem [thread:$0]  %s16_s11, 32, %s18_s13, [#allocation5], %s190_s14, %s190_s14, %s191_s15  }
   0x7   :  { %183 = dma.done.wait [#allocation5], 128  }
   0x8   :  { %184 = vsyncadd [#allocation5], 4294967168  ;;  %v105_v0 = vld [vmem:[#allocation4] sm:$0x3]  ;;  %s192_s16 = smov [#allocation7]   ;;  %s79_s19 = sshll.u32 %s219_s1, 4  ;;  %s80_s19 = int_to_ptr.hbm [resolvable:$true] %s79_s19 }
   0x9   :  { %v57_v1 = vrot.slane %v105_v0, 4  ;;  %v49_v2 = vmul.f32 %v105_v0, %v105_v0  ;;  %s77_s0 = sshll.u32 %s192_s16, 4  ;;  %s193_s20 = smov [#allocation8]   ;;  %s78_s0 = int_to_ptr.vmem [resolvable:$true] %s77_s0 }
   0xa   :  { %s88_s21 = sshll.u32 %s193_s20, 4  ;;  %s90_s24 = sshll.u32 %s220_s2, 4  ;;  %s89_s21 = int_to_ptr.vmem [resolvable:$true] %s88_s21  ;;  %s91_s24 = int_to_ptr.hbm [resolvable:$true] %s90_s24 }
   0xb   :  { %v58_v3 = vadd.f32 %v105_v0, %v57_v1  ;;  %v65_v4 = vrot.slane %v49_v2, 4 }
   0xd   :  { %v59_v5 = vrot.slane %v58_v3, 2  ;;  %v66_v6 = vadd.f32 %v65_v4, %v49_v2 }
   0xf   :  { %v60_v7 = vadd.f32 %v59_v5, %v58_v3  ;;  %v67_v8 = vrot.slane %v66_v6, 2 }
  0x11   :  { %v61_v9 = vrot.slane %v60_v7, 1  ;;  %v68_v10 = vadd.f32 %v67_v8, %v66_v6 }
  0x13   :  { %v62_v11 = vadd.f32 %v61_v9, %v60_v7  ;;  %v69_v12 = vrot.slane %v68_v10, 1 }
  0x15   :  { %63 = vst [vmem:[#allocation7] sm:$0x1] %v62_v11  ;;  %v70_v13 = vadd.f32 %v69_v12, %v68_v10 }
  0x16   :  { %82 = dma.vmem_to_hbm [thread:$0]  %s78_s0, 16, %s80_s19, [#allocation6]  }
  0x17   :  { %71 = vst [vmem:[#allocation8] sm:$0x1] %v70_v13 }
  0x18   :  { %93 = dma.vmem_to_hbm [thread:$0]  %s89_s21, 16, %s91_s24, [#allocation9]  }
  0x19   :  { %185 = dma.done.wait [#allocation6], 16  }
  0x1a   :  { %186 = vsyncadd [#allocation6], 4294967280 }
  0x1b   :  { %187 = dma.done.wait [#allocation9], 16  }
  0x1c   :  { %188 = vsyncadd [#allocation9], 4294967280 }
  0x1d   :  { %102 = vsyncpa [#allocation5], 1 }
  0x1e   :  { %103 = vsyncpa [#allocation6], 1 }
  0x1f   :  { %104 = vsyncpa [#allocation9], 1 }

</bundles_post_ra>
